<compile_context>
chip_gen: v6e
topology: v6e:2x2x1
jax: 0.10.0
libtpu: 0.0.40
codegen_flags: <defaults>
</compile_context>

<pallas_src>
import functools

import jax
import jax.numpy as jnp
from jax.experimental import pallas as pl
from jax.experimental.pallas import tpu as pltpu

_MAX_TILE_T = 2048                    # token tile (lane axis), 128/256-aligned
_MAX_TILE_B = 8                       # batch sub-tile per block
_TARGET_BLOCK_BYTES = 2 * 1024 * 1024  # ~2 MiB per input block


def _choose_tile_t(t):
    """Pick a token tile that divides T (no pad/slice) whenever possible."""
    if t <= _MAX_TILE_T:
        return t, t                    # full T block (== full array dim)
    # Prefer 256-aligned divisors (full MXU passes on v6e/v7x), then 128.
    for step in (256, 128):
        cand = (_MAX_TILE_T // step) * step
        while cand >= step:
            if t % cand == 0:
                return cand, t
            cand -= step
    # Rare fallback: pad T (costs one extra pad + slice HBM pass).
    tile = _MAX_TILE_T
    return tile, int(pl.cdiv(t, tile) * tile)


def _choose_tile_b(b, d, tile_t):
    """Largest divisor of B (<= 8) that brings the block toward ~2 MiB."""
    per_batch_bytes = d * tile_t * 4
    want = max(1, _TARGET_BLOCK_BYTES // per_batch_bytes)
    want = int(min(want, _MAX_TILE_B, b))
    for cand in range(want, 0, -1):
        if b % cand == 0:
            return cand
    return 1


def _vq_kernel(x_ref, e_ref, et_ref, he2_ref, q_ref, idx_ref, sqerr_ref, *,
               tile_b, tile_t, t_actual, needs_mask):
    """One (batch-tile, token-tile) step of vector quantization.

    x_ref    : (Bb, D, Tt) f32  input block, NCL layout
    e_ref    : (K, D)      f32  codebook (VMEM resident, constant index_map)
    et_ref   : (D, K)      f32  codebook transposed (hoisted in wrapper)
    he2_ref  : (K, 1)      f32  0.5 * ||e_k||^2 (hoisted in wrapper)
    q_ref    : (Bb, D, Tt) f32  quantized output block (same layout as input)
    idx_ref  : (Bb, 1, Tt) i32  argmin code indices (lane-dense)
    sqerr_ref: (1,1,1,1)   f32  sum((q - x)^2) over this block (padded cols
                                masked only in the rare padded-T fallback)
    """
    e = e_ref[...]                     # (K, D)
    et = et_ref[...]                   # (D, K)
    he2 = he2_ref[...]                 # (K, 1)
    k = e.shape[0]

    if needs_mask:
        # Only built when T had to be padded (static flag => no cost otherwise).
        t0 = pl.program_id(1) * tile_t
        col = jax.lax.broadcasted_iota(jnp.int32, (1, tile_t), 1) + t0
        valid = (col < t_actual).astype(jnp.float32)   # (1, Tt)

    sq = jnp.zeros((1, 1), dtype=jnp.float32)

    for bi in range(tile_b):           # short, statically unrolled
        x = x_ref[bi]                  # (D, Tt)

        # 0.5*||e_k||^2 - e_k . x_t  -- same argmin as the full L2 distance.
        xe = jnp.dot(e, x, preferred_element_type=jnp.float32)    # (K, Tt) MXU
        score = he2 - xe                                          # (K, Tt)

        ids = jax.lax.broadcasted_iota(jnp.int32, score.shape, 0)  # (K, Tt)
        min_s = jnp.min(score, axis=0, keepdims=True)              # (1, Tt)
        # First index attaining the minimum (torch.argmin tie-breaking).
        idx = jnp.min(jnp.where(score == min_s, ids, k), axis=0, keepdims=True)

        onehot = (ids == idx).astype(jnp.float32)                  # (K, Tt)
        q = jnp.dot(et, onehot, preferred_element_type=jnp.float32)  # (D, Tt)

        q_ref[bi] = q
        idx_ref[bi] = idx.astype(jnp.int32)

        diff = q - x
        err = diff * diff
        if needs_mask:
            err = err * valid
        sq = sq + jnp.sum(err, keepdims=True)

    sqerr_ref[...] = sq.reshape(1, 1, 1, 1)


def _vq_pallas(x_bdt, emb, emb_t, half_e2, t_actual, tile_b, tile_t,
               needs_mask):
    b, d, t_pad = x_bdt.shape
    k = emb.shape[0]
    gb = b // tile_b
    gt = t_pad // tile_t

    out_shape = (
        jax.ShapeDtypeStruct((b, d, t_pad), jnp.float32),   # quantized (NCL)
        jax.ShapeDtypeStruct((b, 1, t_pad), jnp.int32),     # indices
        jax.ShapeDtypeStruct((gb, gt, 1, 1), jnp.float32),  # per-block sq.err
    )

    return pl.pallas_call(
        functools.partial(_vq_kernel, tile_b=tile_b, tile_t=tile_t,
                          t_actual=t_actual, needs_mask=needs_mask),
        out_shape=out_shape,
        grid=(gb, gt),
        in_specs=[
            pl.BlockSpec((tile_b, d, tile_t), lambda bi, ti: (bi, 0, ti)),
            pl.BlockSpec((k, d), lambda bi, ti: (0, 0)),      # codebook
            pl.BlockSpec((d, k), lambda bi, ti: (0, 0)),      # codebook^T
            pl.BlockSpec((k, 1), lambda bi, ti: (0, 0)),      # 0.5*||e||^2
        ],
        out_specs=(
            pl.BlockSpec((tile_b, d, tile_t), lambda bi, ti: (bi, 0, ti)),
            pl.BlockSpec((tile_b, 1, tile_t), lambda bi, ti: (bi, 0, ti)),
            pl.BlockSpec((1, 1, 1, 1), lambda bi, ti: (bi, ti, 0, 0)),
        ),
        compiler_params=pltpu.CompilerParams(
            dimension_semantics=("parallel", "parallel"),
            # <= ~48 MiB keeps double-buffered blocks safe on v7x's 64 MiB
            # VMEM while overriding v5e's 16 MiB scoped default.
            vmem_limit_bytes=48 * 1024 * 1024),
    )(x_bdt, emb, emb_t, half_e2)


@functools.partial(jax.jit, static_argnames=("commitment_cost",))
def vector_quantizer_forward(inputs, embedding, commitment_cost=0.25):
    """inputs: (B, D, T) f32 (PyTorch NCL), embedding: (K, D) f32."""
    b, d, t = inputs.shape
    k = embedding.shape[0]

    x_in = inputs.astype(jnp.float32)
    emb = embedding.astype(jnp.float32)

    tile_t, t_pad = _choose_tile_t(t)
    tile_b = _choose_tile_b(b, d, tile_t)
    needs_mask = t_pad != t

    x = x_in
    if needs_mask:
        # Rare fallback (T > _MAX_TILE_T with no 128-multiple divisor).
        x = jnp.pad(x, ((0, 0), (0, 0), (0, t_pad - t)))

    # Hoisted, loop-invariant codebook quantities (tiny, VMEM-resident).
    emb_t = emb.T                                              # (D, K)
    half_e2 = 0.5 * jnp.sum(emb * emb, axis=1, keepdims=True)  # (K, 1)

    quantized_pad, idx_pad, sqerr = _vq_pallas(
        x, emb, emb_t, half_e2, t, tile_b, tile_t, needs_mask)

    quantized = quantized_pad[:, :, :t] if needs_mask else quantized_pad
    indices = idx_pad[:, 0, :t].reshape(-1, 1)                 # (B*T, 1)
    encodings = (indices == jnp.arange(k, dtype=jnp.int32)[None, :]
                 ).astype(jnp.float32)                         # (B*T, K)

    mse = jnp.sum(sqerr) / jnp.float32(b * d * t)
    # e_latent_loss == q_latent_loss in value (detach only affects grads)
    loss = (1.0 + commitment_cost) * mse
    # TODO(synk): training-time detach semantics of the e/q latent losses
    # need a custom VJP; only forward values are reproduced here.

    # Straight-through estimator: forward value == quantized.
    quantized_st = x_in + jax.lax.stop_gradient(quantized - x_in)

    avg_probs = jnp.mean(encodings, axis=0)
    perplexity = jnp.exp(-jnp.sum(avg_probs * jnp.log(avg_probs + 1e-10)))

    return loss, quantized_st, perplexity, embedding, indices, encodings


def _reference_forward(inputs, embedding, commitment_cost):
    """Pure-jnp replica of the PyTorch forward (for verification only)."""
    b, d, t = inputs.shape
    x_btd = jnp.transpose(inputs, (0, 2, 1))
    flat = x_btd.reshape(-1, d)
    dist = (jnp.sum(flat * flat, axis=1, keepdims=True)
            + jnp.sum(embedding * embedding, axis=1)
            - 2.0 * flat @ embedding.T)
    idx = jnp.argmin(dist, axis=1)[:, None].astype(jnp.int32)
    enc = (idx == jnp.arange(embedding.shape[0])[None, :]).astype(jnp.float32)
    q_btd = (enc @ embedding).reshape(b, t, d)
    mse = jnp.mean((q_btd - x_btd) ** 2)
    loss = (1.0 + commitment_cost) * mse
    avg = jnp.mean(enc, axis=0)
    perp = jnp.exp(-jnp.sum(avg * jnp.log(avg + 1e-10)))
    return loss, jnp.transpose(q_btd, (0, 2, 1)), perp, idx, enc


if __name__ == "__main__":
    num_embeddings = 16     # K
    embedding_dim = 32      # D
    commitment_cost = 0.25

    key = jax.random.PRNGKey(0)
    k_emb, k_in1, k_in2 = jax.random.split(key, 3)

    # nn.Embedding weight ~ U(-1/K, 1/K), deterministic init
    embedding = jax.random.uniform(
        k_emb, (num_embeddings, embedding_dim),
        minval=-1.0 / num_embeddings, maxval=1.0 / num_embeddings,
        dtype=jnp.float32)

    for (B, T, kx) in ((2, 8, k_in1), (3, 128, k_in2)):
        inputs = jax.random.normal(kx, (B, embedding_dim, T), dtype=jnp.float32)

        outs = vector_quantizer_forward(inputs, embedding,
                                        commitment_cost=commitment_cost)
        outs = jax.block_until_ready(outs)
        loss, quantized, perplexity, emb_w, enc_idx, encodings = outs

        assert quantized.shape == (B, embedding_dim, T)
        assert enc_idx.shape == (B * T, 1)
        assert encodings.shape == (B * T, num_embeddings)
        assert bool(jnp.all(jnp.sum(encodings, axis=1) == 1.0))

        r_loss, r_q, r_perp, r_idx, r_enc = _reference_forward(
            inputs, embedding, commitment_cost)
        assert bool(jnp.all(enc_idx == r_idx))
        assert bool(jnp.allclose(quantized, r_q, atol=1e-5))
        assert bool(jnp.allclose(loss, r_loss, rtol=1e-4, atol=1e-6))
        assert bool(jnp.allclose(perplexity, r_perp, rtol=1e-4, atol=1e-6))

    print("KERNEL_OK")
</pallas_src>

<mosaic_0001>
module attributes {stable_mosaic.version = 11 : i64} {
  func.func @_vq_kernel(%arg0: i32, %arg1: i32, %arg2: memref<2x32x8xf32, #tpu.memory_space<vmem>>, %arg3: memref<16x32xf32, #tpu.memory_space<vmem>>, %arg4: memref<32x16xf32, #tpu.memory_space<vmem>>, %arg5: memref<16x1xf32, #tpu.memory_space<vmem>>, %arg6: memref<2x32x8xf32, #tpu.memory_space<vmem>>, %arg7: memref<2x1x8xi32, #tpu.memory_space<vmem>>, %arg8: memref<1x1x1x1xf32, #tpu.memory_space<vmem>>) attributes {dimension_semantics = [#tpu.dimension_semantics<parallel>, #tpu.dimension_semantics<parallel>], iteration_bounds = array<i64: 1, 1>, scalar_prefetch = 0 : i64, scratch_operands = 0 : i64, tpu.core_type = #tpu.core_type<tc>, window_params = [{transform_indices = @transform_0, window_bounds = array<i64: 2, 32, 8>}, {pipeline_mode = #tpu.pipeline_mode<synchronous>, transform_indices = @transform_1, window_bounds = array<i64: 16, 32>}, {pipeline_mode = #tpu.pipeline_mode<synchronous>, transform_indices = @transform_2, window_bounds = array<i64: 32, 16>}, {pipeline_mode = #tpu.pipeline_mode<synchronous>, transform_indices = @transform_3, window_bounds = array<i64: 16, 1>}, {transform_indices = @transform_4, window_bounds = array<i64: 2, 32, 8>}, {transform_indices = @transform_5, window_bounds = array<i64: 2, 1, 8>}, {transform_indices = @transform_6, window_bounds = array<i64: 1, 1, 1, 1>}]} {
    %c0 = arith.constant 0 : index
    %c0_0 = arith.constant 0 : index
    %0 = vector.load %arg3[%c0, %c0_0] : memref<16x32xf32, #tpu.memory_space<vmem>>, vector<16x32xf32>
    %c0_1 = arith.constant 0 : index
    %c0_2 = arith.constant 0 : index
    %1 = vector.load %arg4[%c0_1, %c0_2] : memref<32x16xf32, #tpu.memory_space<vmem>>, vector<32x16xf32>
    %c0_3 = arith.constant 0 : index
    %c0_4 = arith.constant 0 : index
    %2 = vector.load %arg5[%c0_3, %c0_4] : memref<16x1xf32, #tpu.memory_space<vmem>>, vector<16x1xf32>
    %cst = arith.constant 0.000000e+00 : f32
    %3 = vector.broadcast %cst : f32 to vector<1x1xf32>
    %c0_5 = arith.constant 0 : index
    %c0_6 = arith.constant 0 : index
    %c0_7 = arith.constant 0 : index
    %4 = vector.load %arg2[%c0_5, %c0_6, %c0_7] : memref<2x32x8xf32, #tpu.memory_space<vmem>>, vector<1x32x8xf32>
    %5 = vector.shape_cast %4 : vector<1x32x8xf32> to vector<32x8xf32>
    %cst_8 = arith.constant dense<0.000000e+00> : vector<16x8xf32>
    %6 = tpu.matmul %0, %5, %cst_8 {dimension_numbers = #tpu.dot_dimension_numbers<[1], [0], [0], [1], [0, 0, 1, 1], [], []>} : vector<16x32xf32>, vector<32x8xf32>, vector<16x8xf32> -> vector<16x8xf32>
    %7 = vector.broadcast %2 : vector<16x1xf32> to vector<16x8xf32>
    %8 = arith.subf %7, %6 : vector<16x8xf32>
    %9 = tpu.iota {dimensions = array<i32: 0>} : vector<16x8xi32>
    %cst_9 = arith.constant dense<0x7F800000> : vector<8xf32>
    %10 = vector.multi_reduction <minimumf>, %8, %cst_9 [0] : vector<16x8xf32> to vector<8xf32>
    %11 = vector.shape_cast %10 : vector<8xf32> to vector<1x8xf32>
    %12 = vector.broadcast %11 : vector<1x8xf32> to vector<16x8xf32>
    %13 = arith.cmpf oeq, %8, %12 : vector<16x8xf32>
    %c16_i32 = arith.constant 16 : i32
    %14 = vector.broadcast %c16_i32 : i32 to vector<16x8xi32>
    %15 = arith.select %13, %9, %14 : vector<16x8xi1>, vector<16x8xi32>
    %cst_10 = arith.constant dense<2147483647> : vector<8xi32>
    %16 = vector.multi_reduction <minsi>, %15, %cst_10 [0] : vector<16x8xi32> to vector<8xi32>
    %17 = vector.shape_cast %16 : vector<8xi32> to vector<1x8xi32>
    %18 = vector.broadcast %17 : vector<1x8xi32> to vector<16x8xi32>
    %19 = arith.cmpi eq, %9, %18 : vector<16x8xi32>
    %20 = arith.extui %19 : vector<16x8xi1> to vector<16x8xi32>
    %21 = arith.sitofp %20 : vector<16x8xi32> to vector<16x8xf32>
    %cst_11 = arith.constant dense<0.000000e+00> : vector<32x8xf32>
    %22 = tpu.matmul %1, %21, %cst_11 {dimension_numbers = #tpu.dot_dimension_numbers<[1], [0], [0], [1], [0, 0, 1, 1], [], []>} : vector<32x16xf32>, vector<16x8xf32>, vector<32x8xf32> -> vector<32x8xf32>
    %c0_12 = arith.constant 0 : index
    %c0_13 = arith.constant 0 : index
    %c0_14 = arith.constant 0 : index
    %23 = vector.load %arg6[%c0_12, %c0_13, %c0_14] : memref<2x32x8xf32, #tpu.memory_space<vmem>>, vector<1x32x8xf32>
    %24 = vector.shape_cast %23 : vector<1x32x8xf32> to vector<32x8xf32>
    %25 = vector.shape_cast %22 : vector<32x8xf32> to vector<1x32x8xf32>
    tpu.vector_store %arg6[%c0_12, %c0_13, %c0_14], %25 {strides = array<i32>} : memref<2x32x8xf32, #tpu.memory_space<vmem>>, vector<1x32x8xf32>,
    %c0_15 = arith.constant 0 : index
    %c0_16 = arith.constant 0 : index
    %c0_17 = arith.constant 0 : index
    %26 = vector.load %arg7[%c0_15, %c0_16, %c0_17] : memref<2x1x8xi32, #tpu.memory_space<vmem>>, vector<1x1x8xi32>
    %27 = vector.shape_cast %26 : vector<1x1x8xi32> to vector<1x8xi32>
    %28 = vector.shape_cast %17 : vector<1x8xi32> to vector<1x1x8xi32>
    tpu.vector_store %arg7[%c0_15, %c0_16, %c0_17], %28 {strides = array<i32>} : memref<2x1x8xi32, #tpu.memory_space<vmem>>, vector<1x1x8xi32>,
    %29 = arith.subf %22, %5 : vector<32x8xf32>
    %30 = arith.mulf %29, %29 : vector<32x8xf32>
    %31 = vector.shape_cast %30 : vector<32x8xf32> to vector<1x32x8xf32>
    %cst_18 = arith.constant dense<0.000000e+00> : vector<1xf32>
    %32 = vector.multi_reduction <add>, %31, %cst_18 [1, 2] : vector<1x32x8xf32> to vector<1xf32>
    %33 = vector.shape_cast %32 : vector<1xf32> to vector<1x1x1xf32>
    %34 = vector.extract %33[0, 0, 0] : f32 from vector<1x1x1xf32>
    %35 = vector.broadcast %34 : f32 to vector<1x1xf32>
    %36 = arith.addf %3, %35 : vector<1x1xf32>
    %c1 = arith.constant 1 : index
    %c0_19 = arith.constant 0 : index
    %c0_20 = arith.constant 0 : index
    %37 = vector.load %arg2[%c1, %c0_19, %c0_20] : memref<2x32x8xf32, #tpu.memory_space<vmem>>, vector<1x32x8xf32>
    %38 = vector.shape_cast %37 : vector<1x32x8xf32> to vector<32x8xf32>
    %cst_21 = arith.constant dense<0.000000e+00> : vector<16x8xf32>
    %39 = tpu.matmul %0, %38, %cst_21 {dimension_numbers = #tpu.dot_dimension_numbers<[1], [0], [0], [1], [0, 0, 1, 1], [], []>} : vector<16x32xf32>, vector<32x8xf32>, vector<16x8xf32> -> vector<16x8xf32>
    %40 = vector.broadcast %2 : vector<16x1xf32> to vector<16x8xf32>
    %41 = arith.subf %40, %39 : vector<16x8xf32>
    %42 = tpu.iota {dimensions = array<i32: 0>} : vector<16x8xi32>
    %cst_22 = arith.constant dense<0x7F800000> : vector<8xf32>
    %43 = vector.multi_reduction <minimumf>, %41, %cst_22 [0] : vector<16x8xf32> to vector<8xf32>
    %44 = vector.shape_cast %43 : vector<8xf32> to vector<1x8xf32>
    %45 = vector.broadcast %44 : vector<1x8xf32> to vector<16x8xf32>
    %46 = arith.cmpf oeq, %41, %45 : vector<16x8xf32>
    %c16_i32_23 = arith.constant 16 : i32
    %47 = vector.broadcast %c16_i32_23 : i32 to vector<16x8xi32>
    %48 = arith.select %46, %42, %47 : vector<16x8xi1>, vector<16x8xi32>
    %cst_24 = arith.constant dense<2147483647> : vector<8xi32>
    %49 = vector.multi_reduction <minsi>, %48, %cst_24 [0] : vector<16x8xi32> to vector<8xi32>
    %50 = vector.shape_cast %49 : vector<8xi32> to vector<1x8xi32>
    %51 = vector.broadcast %50 : vector<1x8xi32> to vector<16x8xi32>
    %52 = arith.cmpi eq, %42, %51 : vector<16x8xi32>
    %53 = arith.extui %52 : vector<16x8xi1> to vector<16x8xi32>
    %54 = arith.sitofp %53 : vector<16x8xi32> to vector<16x8xf32>
    %cst_25 = arith.constant dense<0.000000e+00> : vector<32x8xf32>
    %55 = tpu.matmul %1, %54, %cst_25 {dimension_numbers = #tpu.dot_dimension_numbers<[1], [0], [0], [1], [0, 0, 1, 1], [], []>} : vector<32x16xf32>, vector<16x8xf32>, vector<32x8xf32> -> vector<32x8xf32>
    %c1_26 = arith.constant 1 : index
    %c0_27 = arith.constant 0 : index
    %c0_28 = arith.constant 0 : index
    %56 = vector.load %arg6[%c1_26, %c0_27, %c0_28] : memref<2x32x8xf32, #tpu.memory_space<vmem>>, vector<1x32x8xf32>
    %57 = vector.shape_cast %56 : vector<1x32x8xf32> to vector<32x8xf32>
    %58 = vector.shape_cast %55 : vector<32x8xf32> to vector<1x32x8xf32>
    tpu.vector_store %arg6[%c1_26, %c0_27, %c0_28], %58 {strides = array<i32>} : memref<2x32x8xf32, #tpu.memory_space<vmem>>, vector<1x32x8xf32>,
    %c1_29 = arith.constant 1 : index
    %c0_30 = arith.constant 0 : index
    %c0_31 = arith.constant 0 : index
    %59 = vector.load %arg7[%c1_29, %c0_30, %c0_31] : memref<2x1x8xi32, #tpu.memory_space<vmem>>, vector<1x1x8xi32>
    %60 = vector.shape_cast %59 : vector<1x1x8xi32> to vector<1x8xi32>
    %61 = vector.shape_cast %50 : vector<1x8xi32> to vector<1x1x8xi32>
    tpu.vector_store %arg7[%c1_29, %c0_30, %c0_31], %61 {strides = array<i32>} : memref<2x1x8xi32, #tpu.memory_space<vmem>>, vector<1x1x8xi32>,
    %62 = arith.subf %55, %38 : vector<32x8xf32>
    %63 = arith.mulf %62, %62 : vector<32x8xf32>
    %64 = vector.shape_cast %63 : vector<32x8xf32> to vector<1x32x8xf32>
    %cst_32 = arith.constant dense<0.000000e+00> : vector<1xf32>
    %65 = vector.multi_reduction <add>, %64, %cst_32 [1, 2] : vector<1x32x8xf32> to vector<1xf32>
    %66 = vector.shape_cast %65 : vector<1xf32> to vector<1x1x1xf32>
    %67 = vector.extract %66[0, 0, 0] : f32 from vector<1x1x1xf32>
    %68 = vector.broadcast %67 : f32 to vector<1x1xf32>
    %69 = arith.addf %36, %68 : vector<1x1xf32>
    %70 = vector.shape_cast %69 : vector<1x1xf32> to vector<1x1x1x1xf32>
    %c0_33 = arith.constant 0 : index
    %c0_34 = arith.constant 0 : index
    %c0_35 = arith.constant 0 : index
    %c0_36 = arith.constant 0 : index
    %71 = vector.load %arg8[%c0_33, %c0_34, %c0_35, %c0_36] : memref<1x1x1x1xf32, #tpu.memory_space<vmem>>, vector<1x1x1x1xf32>
    tpu.vector_store %arg8[%c0_33, %c0_34, %c0_35, %c0_36], %70 {strides = array<i32>} : memref<1x1x1x1xf32, #tpu.memory_space<vmem>>, vector<1x1x1x1xf32>,
    return
  }
  func.func @transform_0(%arg0: i32, %arg1: i32) -> (i32, i32, i32) {
    %c0_i32 = arith.constant 0 : i32
    %c0_i32_0 = arith.constant 0 : i32
    return %arg0, %c0_i32, %arg1 : i32, i32, i32
  }
  func.func @transform_1(%arg0: i32, %arg1: i32) -> (i32, i32) {
    %c0_i32 = arith.constant 0 : i32
    %c0_i32_0 = arith.constant 0 : i32
    %c0_i32_1 = arith.constant 0 : i32
    return %c0_i32, %c0_i32_0 : i32, i32
  }
  func.func @transform_2(%arg0: i32, %arg1: i32) -> (i32, i32) {
    %c0_i32 = arith.constant 0 : i32
    %c0_i32_0 = arith.constant 0 : i32
    %c0_i32_1 = arith.constant 0 : i32
    return %c0_i32, %c0_i32_0 : i32, i32
  }
  func.func @transform_3(%arg0: i32, %arg1: i32) -> (i32, i32) {
    %c0_i32 = arith.constant 0 : i32
    %c0_i32_0 = arith.constant 0 : i32
    %c0_i32_1 = arith.constant 0 : i32
    return %c0_i32, %c0_i32_0 : i32, i32
  }
  func.func @transform_4(%arg0: i32, %arg1: i32) -> (i32, i32, i32) {
    %c0_i32 = arith.constant 0 : i32
    %c0_i32_0 = arith.constant 0 : i32
    return %arg0, %c0_i32, %arg1 : i32, i32, i32
  }
  func.func @transform_5(%arg0: i32, %arg1: i32) -> (i32, i32, i32) {
    %c0_i32 = arith.constant 0 : i32
    %c0_i32_0 = arith.constant 0 : i32
    return %arg0, %c0_i32, %arg1 : i32, i32, i32
  }
  func.func @transform_6(%arg0: i32, %arg1: i32) -> (i32, i32, i32, i32) {
    %c0_i32 = arith.constant 0 : i32
    %c0_i32_0 = arith.constant 0 : i32
    %c0_i32_1 = arith.constant 0 : i32
    return %arg0, %arg1, %c0_i32, %c0_i32_0 : i32, i32, i32, i32
  }
}

</mosaic_0001>

<bundles_post_ra>
// kernel: eq.8
= control target key start
LH: loop header
LB: loop body
LE: loop exit
PB: predicated region body
PF: predicated region fallthrough
CT: control target
= control target key end

     0   :  { %vm8_vm0 = vcmask 64512   ;;  %vm14_vm1 = vcmask 130112   ;;  %s42_s0 = inlined_call_operand.vmem [shape: s32[2,8], index: 0, kind: input, shape index: {}]   ;;  %s43_s1 = inlined_call_operand.vmem [shape: s32[16], index: 1, kind: output, shape index: {}]  }
   0x1   :  { %v5_v0 = vld [vmem:[%s42_s0] sm:$0x3]  ;;  %s25_s0 = smov 8  }
   0x2   :  { %6 = vst [vmem:[#allocation1] sm:$0x3] %v5_v0 }
   0x9   :  { %v11_v1 = vld [vmem:[#allocation1 + $0x1] sm:$0x1]   ;;  %v7_v2 = vld [vmem:[#allocation1] sm:$0x1]  }
   0xa   :  { %12 = vrot.lane.b32.xlu0 %v11_v1, %s25_s0  ;;  %9 = vst.msk [vmem:[#allocation0] sm:$0x1] %vm8_vm0, %v7_v2  }
  0x7c   :  { %v13_v3 = vpop.permute.xlu0 %12  }
  0x7d   :  { %15 = vst.msk [vmem:[#allocation0] sm:$0x1] %vm14_vm1, %v13_v3  }
  0x84   :  { %v20_v4 = vld [vmem:[#allocation0] sm:$0x1] }
  0x85   :  { %23 = vst [vmem:[%s43_s1] sm:$0x1] %v20_v4 }

// kernel: squeeze.1
= control target key start
LH: loop header
LB: loop body
LE: loop exit
PB: predicated region body
PF: predicated region fallthrough
CT: control target
= control target key end

     0   :  { %s77_s0 = inlined_call_operand.vmem [shape: s32[2,8], index: 0, kind: input, shape index: {}]   ;;  %s78_s1 = inlined_call_operand.hbm [shape: s32[16,1], index: 1, kind: output, shape index: {}]  }
   0x1   :  { %v6_v0 = vld [vmem:[%s77_s0] sm:$0x3] }
   0x2   :  { %7 = vst [vmem:[#allocation3] sm:$0x3] %v6_v0 }
   0x3   :  { %2 = vsyncpa [#allocation1], 0  ;;  %vm9_vm0 = vcmask 64512   ;;  %s59_s0 = smov 8   ;;  %vm15_vm1 = vcmask 130112   ;;  %s60_s8 = smov [#allocation0]  }
   0x4   :  { %s29_s9 = sshll.u32 %s60_s8, 4  ;;  %s30_s9 = int_to_ptr.vmem [resolvable:$true] %s29_s9 }
   0x5   :  { %s37_s10 = scalar_lea.vmem %s30_s9, 16  ;;  %s41_s11 = scalar_lea.vmem %s30_s9, 32 }
   0x6   :  { %p38_p0 = scmp.ne.s32.totalorder %s30_s9, %s37_s10  ;;  %p42_p1 = scmp.lt.s32.totalorder %s30_s9, %s30_s9 }
   0x7   :  { %p43_p2 = scmp.lt.s32.totalorder %s41_s11, %s37_s10 }
   0x9   :  { %v12_v1 = vld [vmem:[#allocation3 + $0x1] sm:$0x1]   ;;  %v8_v2 = vld [vmem:[#allocation3] sm:$0x1]   ;;  %p44_p3 = por %p43_p2, %p42_p1 }
   0xa   :  { %13 = vrot.lane.b32.xlu0 %v12_v1, %s59_s0  ;;  %10 = vst.msk [vmem:[#allocation2] sm:$0x1] %vm9_vm0, %v8_v2  }
   0xb   :  { %p45_p4 = pnand %p44_p3, %p38_p0 }
  0x7c   :  { %v14_v3 = vpop.permute.xlu0 %13  }
  0x7d   :  { %16 = vst.msk [vmem:[#allocation2] sm:$0x1] %vm15_vm1, %v14_v3  }
  0x84   :  { %v21_v4 = vld [vmem:[#allocation2] sm:$0x1] }
  0x85   :  { %24 = vst [vmem:[#allocation0] sm:$0x1] %v21_v4 }
  0x86   :  { %48 = shalt.err (!%p45_p4)
}
  0x87   :  { %32 = dma.vmem_to_hbm [thread:$0]  %s30_s9, 16, %s78_s1, [#allocation1]  }
  0x88   :  { %57 = dma.done.wait [#allocation1], 16  }
  0x89   :  { %58 = vsyncadd [#allocation1], 4294967280 }
  0x8a   :  { %34 = vsyncpa [#allocation1], 1 }

// kernel: vector_quantizer_forward.1
= control target key start
LH: loop header
LB: loop body
LE: loop exit
PB: predicated region body
PF: predicated region fallthrough
CT: control target
= control target key end

     0   :  { %vm33_vm0 = vcmask 261120   ;;  %v674_v3 = vmov 0   ;;  %s920_s0 = inlined_call_operand.vmem [shape: f32[2,32,8], index: 0, kind: input, shape index: {}]   ;;  %s921_s1 = inlined_call_operand.vmem [shape: f32[16,32], index: 1, kind: input, shape index: {}]   ;;  %s922_s2 = inlined_call_operand.vmem [shape: f32[32,16], index: 2, kind: input, shape index: {}]   ;;  %s923_s3 = inlined_call_operand.vmem [shape: f32[16,1], index: 3, kind: input, shape index: {}]   ;;  %s924_s4 = inlined_call_operand.vmem [shape: f32[2,32,8], index: 4, kind: output, shape index: {0}]   ;;  %s925_s5 = inlined_call_operand.vmem [shape: s32[2,1,8], index: 5, kind: output, shape index: {1}]   ;;  %s926_s6 = inlined_call_operand.hbm [shape: f32[1,1,1,1], index: 6, kind: output, shape index: {2}]  }
   0x1   :  { %v715_v0 = vld [vmem:[%s920_s0 + $0x18] sm:$0xff]  ;;  %v720_v1 = vld [vmem:[%s920_s0 + $0x10] sm:$0xff]  ;;  %v726_v2 = vld [vmem:[%s921_s1] sm:$0xff]  ;;  %651 = vset.pattern.permute.xlu0 %v674_v3 }
   0x2   :  { %602 = vmatprep.subr.mxu0 %v715_v0  ;;  %v732_v4 = vld [vmem:[%s920_s0 + $0x8] sm:$0xff]  ;;  %610 = vmatprep.mubr.msk.f32.mxu0 %vm33_vm0, %v726_v2  ;;  %v27_v5 = vld [vmem:[%s923_s3] sm:$0xff] }
   0x3   :  { %603 = vmatpush3.msra.mxu0 %v715_v0 }
   0x4   :  { %12 = vsyncpa [#allocation3], 0  ;;  %604 = vmatprep.subr.mxu0 %v720_v1  ;;  %117 = vperm.xlu0 %651, %v27_v5   ;;  %v744_v6 = vld [vmem:[%s920_s0] sm:$0xff]  ;;  %v28_v7 = vld [vmem:[%s923_s3 + $0x8] sm:$0xff]  ;;  %vm163_vm1 = vcmask 130048   ;;  %vm130_vm2 = vcmask 64512   ;;  %v127_v20 = vlaneseq }
   0x5   :  { %605 = vmatpush3.msra.mxu0 %v720_v1  ;;  %v754_v8 = vld [vmem:[%s921_s1 + $0x8] sm:$0xff]  ;;  %v23_v9 = vld [vmem:[%s922_s2] sm:$0xff]  ;;  %vm265_vm8 = vcmask 57344   ;;  %v675_v39 = vmov 1.0   ;;  %v798_v41 = vld [vmem:[%s920_s0 + $0x38] sm:$0xff]  ;;  %s676_s18 = smov [#allocation2]  }
   0x6   :  { %606 = vmatprep.subr.mxu0 %v732_v4  ;;  %617 = vmatprep.mubr.msk.f32.mxu1 %vm163_vm1, %v23_v9  ;;  %v773_v23 = vshrl.u32 %v127_v20, 7  ;;  %v793_v40 = vld [vmem:[%s922_s2 + $0x8] sm:$0xff]  ;;  %v804_v42 = vld [vmem:[%s922_s2 + $0x10] sm:$0xff]  ;;  %v821_v44 = vld [vmem:[%s922_s2 + $0x18] sm:$0xff]  ;;  %s537_s19 = sshll.u32 %s676_s18, 4  ;;  %s538_s19 = int_to_ptr.vmem [resolvable:$true] %s537_s19 }
   0x7   :  { %607 = vmatpush3.msra.mxu0 %v732_v4  ;;  %v810_v43 = vld [vmem:[%s920_s0 + $0x30] sm:$0xff]  ;;  %v826_v45 = vld [vmem:[%s920_s0 + $0x28] sm:$0xff]  ;;  %v833_v46 = vld [vmem:[%s920_s0 + $0x20] sm:$0xff]  ;;  %s652_s21 = scalar_lea.vmem %s538_s19, 16  ;;  %s656_s22 = scalar_lea.vmem %s538_s19, 32 }
   0x8   :  { %608 = vmatprep.subr.mxu0 %v744_v6  ;;  %122 = vperm.xlu0 %651, %v28_v7   ;;  %v776_v26 = vadd.s32 8, %v773_v23  ;;  %p653_p0 = scmp.ne.s32.totalorder %s538_s19, %s652_s21  ;;  %p657_p1 = scmp.lt.s32.totalorder %s538_s19, %s538_s19 }
   0x9   :  { %609 = vmatpush3.msra.mxu0 %v744_v6  ;;  %p658_p2 = scmp.lt.s32.totalorder %s656_s22, %s652_s21 }
   0xa   :  { %611 = vmatmul.mubr.msk.f32.vlgmr.msra.gmra.mxu0 %vm33_vm0, %v754_v8 }
   0xb   :  { %638 = vmatprep.mubr.msk.f32.mxu0 %vm163_vm1, %v23_v9  ;;  %p659_p3 = por %p658_p2, %p657_p1 }
   0xd   :  { %p660_p4 = pnand %p659_p3, %p653_p0 }
  0x7f   :  { %v765_v10 = vpop.permute.xlu0 %117 }
  0x83   :  { %v767_v11 = vpop.permute.xlu0 %122 }
  0xca   :  { %v612_v12 = vpop.f32.mrf.mxu0 }
  0xcb   :  { %v126_v13 = vsub.f32 %v767_v11, %v612_v12 }
  0xcc   :  { %v106_v14 = vpop.f32.mrf.mxu0 }
  0xcd   :  { %v125_v15 = vsub.f32 %v765_v10, %v106_v14  ;;  %v132_v16 = vsel %vm130_vm2, %v126_v13, inf }
  0xcf   :  { %v131_v17 = vsel %vm130_vm2, %v125_v15, inf }
  0xd0   :  { %v133_v18 = vmin.f32 %v131_v17, %v132_v16 }
  0xd2   :  { %v134_v19 = vrot.slane %v133_v18, 4 }
  0xd4   :  { %v135_v21 = vmin.f32 %v133_v18, %v134_v19 }
  0xd6   :  { %v136_v22 = vrot.slane %v135_v21, 2 }
  0xd8   :  { %v137_v24 = vmin.f32 %v135_v21, %v136_v22 }
  0xda   :  { %v138_v25 = vrot.slane %v137_v24, 1 }
  0xdc   :  { %v139_v27 = vmin.f32 %v137_v24, %v138_v25 }
  0xde   :  { %vm140_vm3 = vcmp.eq.f32.partialorder %v125_v15, %v139_v27  ;;  %vm141_vm4 = vcmp.eq.f32.partialorder %v126_v13, %v139_v27 }
  0xdf   :  { %v142_v28 = vsel %vm140_vm3, %v773_v23, 16  ;;  %v143_v29 = vsel %vm141_vm4, %v776_v26, 16 }
  0xe0   :  { %v144_v30 = vsel %vm130_vm2, %v142_v28, 2147483647  ;;  %v145_v31 = vsel %vm130_vm2, %v143_v29, 2147483647 }
  0xe1   :  { %vm146_vm5 = vcmp.lt.s32.totalorder %v144_v30, %v145_v31 }
  0xe2   :  { %v147_v32 = vsel %vm146_vm5, %v144_v30, %v145_v31 }
  0xe3   :  { %v148_v33 = vrot.slane %v147_v32, 4 }
  0xe5   :  { %vm149_vm6 = vcmp.lt.s32.totalorder %v147_v32, %v148_v33 }
  0xe6   :  { %v150_v34 = vsel %vm149_vm6, %v147_v32, %v148_v33 }
  0xe7   :  { %v151_v35 = vrot.slane %v150_v34, 2 }
  0xe9   :  { %vm152_vm7 = vcmp.lt.s32.totalorder %v150_v34, %v151_v35 }
  0xea   :  { %v153_v36 = vsel %vm152_vm7, %v150_v34, %v151_v35 }
  0xeb   :  { %v154_v37 = vrot.slane %v153_v36, 1 }
  0xed   :  { %vm155_vm9 = vcmp.lt.s32.totalorder %v153_v36, %v154_v37 }
  0xee   :  { %v156_v38 = vsel %vm155_vm9, %v153_v36, %v154_v37 }
  0xef   :  { %vm158_vm10 = vcmp.eq.s32.totalorder %v776_v26, %v156_v38  ;;  %266 = vst.msk [vmem:[%s925_s5] sm:$0x1] %vm265_vm8, %v156_v38  ;;  %vm157_vm11 = vcmp.eq.s32.totalorder %v773_v23, %v156_v38 }
  0xf0   :  { %613 = vmatprep.subr.msk.mxu1 %vm158_vm10, %v675_v39 }
  0xf1   :  { %614 = vmatpush3.msk.msra.mxu1 %vm158_vm10, %v675_v39 }
  0xf2   :  { %615 = vmatprep.subr.msk.mxu1 %vm157_vm11, %v675_v39 }
  0xf3   :  { %616 = vmatpush3.msk.msra.mxu1 %vm157_vm11, %v675_v39 }
  0xf4   :  { %618 = vmatmul.mubr.msk.f32.vlgmr.msra.gmra.mxu1 %vm163_vm1, %v793_v40  ;;  %623 = vmatprep.subr.mxu1 %v798_v41 }
  0xf5   :  { %624 = vmatpush3.msra.mxu1 %v798_v41  ;;  %620 = vmatprep.mubr.msk.f32.mxu1 %vm163_vm1, %v804_v42 }
  0xf6   :  { %625 = vmatprep.subr.mxu1 %v810_v43 }
  0xf7   :  { %626 = vmatpush3.msra.mxu1 %v810_v43 }
  0xf8   :  { %621 = vmatmul.mubr.msk.f32.gmra.mxu1 %vm163_vm1, %v821_v44  ;;  %627 = vmatprep.subr.mxu1 %v826_v45 }
  0xf9   :  { %628 = vmatpush3.msra.mxu1 %v826_v45  ;;  %631 = vmatprep.mubr.msk.f32.mxu1 %vm33_vm0, %v726_v2 }
  0xfa   :  { %629 = vmatprep.subr.mxu1 %v833_v46 }
  0xfb   :  { %630 = vmatpush3.msra.mxu1 %v833_v46 }
  0xfc   :  { %632 = vmatmul.mubr.msk.f32.vlgmr.msra.gmra.mxu1 %vm33_vm0, %v754_v8 }
 0x1b4   :  { %v619_v47 = vpop.f32.mrf.mxu1 }
 0x1b5   :  { %262 = vst.msk [vmem:[%s924_s4 + $0x8] sm:$0xff] %vm130_vm2, %v619_v47  ;;  %v268_v48 = vsub.f32 %v619_v47, %v732_v4 }
 0x1b6   :  { %v242_v49 = vpop.f32.mrf.mxu1 }
 0x1b7   :  { %261 = vst.msk [vmem:[%s924_s4] sm:$0xff] %vm130_vm2, %v242_v49  ;;  %v267_v50 = vsub.f32 %v242_v49, %v744_v6  ;;  %v272_v52 = vmul.f32 %v268_v48, %v268_v48 }
 0x1b8   :  { %v622_v51 = vpop.f32.mrf.mxu1 }
 0x1b9   :  { %v271_v53 = vmul.f32 %v267_v50, %v267_v50  ;;  %264 = vst.msk [vmem:[%s924_s4 + $0x18] sm:$0xff] %vm130_vm2, %v622_v51  ;;  %v270_v54 = vsub.f32 %v622_v51, %v715_v0  ;;  %v276_v59 = vsel %vm130_vm2, %v272_v52, 0.0 }
 0x1ba   :  { %v252_v55 = vpop.f32.mrf.mxu1 }
 0x1bb   :  { %v275_v56 = vsel %vm130_vm2, %v271_v53, 0.0  ;;  %263 = vst.msk [vmem:[%s924_s4 + $0x10] sm:$0xff] %vm130_vm2, %v252_v55  ;;  %v269_v57 = vsub.f32 %v252_v55, %v720_v1  ;;  %v274_v60 = vmul.f32 %v270_v54, %v270_v54 }
 0x1bc   :  { %v633_v58 = vpop.f32.mrf.mxu1  ;;  %v277_v2 = vadd.f32 %v276_v59, %v275_v56 }
 0x1bd   :  { %v273_v61 = vmul.f32 %v269_v57, %v269_v57  ;;  %v374_v62 = vsub.f32 %v767_v11, %v633_v58  ;;  %v280_v1 = vsel %vm130_vm2, %v274_v60, 0.0 }
 0x1be   :  { %v364_v63 = vpop.f32.mrf.mxu1 }
 0x1bf   :  { %v373_v0 = vsub.f32 %v765_v10, %v364_v63  ;;  %v278_v3 = vsel %vm130_vm2, %v273_v61, 0.0  ;;  %v376_v5 = vsel %vm130_vm2, %v374_v62, inf }
 0x1c0   :  { %v279_v4 = vadd.f32 %v278_v3, %v277_v2 }
 0x1c1   :  { %v375_v6 = vsel %vm130_vm2, %v373_v0, inf }
 0x1c2   :  { %v377_v7 = vmin.f32 %v375_v6, %v376_v5  ;;  %v281_v8 = vadd.f32 %v280_v1, %v279_v4 }
 0x1c4   :  { %v378_v9 = vrot.slane %v377_v7, 4  ;;  %282 = vadd.xlane.f32.xlu1 %v281_v8 }
 0x1c6   :  { %v379_v12 = vmin.f32 %v377_v7, %v378_v9 }
 0x1c8   :  { %v380_v13 = vrot.slane %v379_v12, 2 }
 0x1ca   :  { %v381_v11 = vmin.f32 %v379_v12, %v380_v13 }
 0x1cc   :  { %v382_v14 = vrot.slane %v381_v11, 1 }
 0x1ce   :  { %v383_v15 = vmin.f32 %v381_v11, %v382_v14 }
 0x1d0   :  { %vm384_vm12 = vcmp.eq.f32.partialorder %v373_v0, %v383_v15  ;;  %vm385_vm13 = vcmp.eq.f32.partialorder %v374_v62, %v383_v15 }
 0x1d1   :  { %v386_v10 = vsel %vm384_vm12, %v773_v23, 16  ;;  %v387_v16 = vsel %vm385_vm13, %v776_v26, 16 }
 0x1d2   :  { %v388_v17 = vsel %vm130_vm2, %v386_v10, 2147483647  ;;  %v389_v18 = vsel %vm130_vm2, %v387_v16, 2147483647 }
 0x1d3   :  { %vm390_vm14 = vcmp.lt.s32.totalorder %v388_v17, %v389_v18 }
 0x1d4   :  { %v391_v19 = vsel %vm390_vm14, %v388_v17, %v389_v18 }
 0x1d5   :  { %v392_v20 = vrot.slane %v391_v19, 4 }
 0x1d7   :  { %vm393_vm15 = vcmp.lt.s32.totalorder %v391_v19, %v392_v20 }
 0x1d8   :  { %v394_v21 = vsel %vm393_vm15, %v391_v19, %v392_v20 }
 0x1d9   :  { %v395_v22 = vrot.slane %v394_v21, 2 }
 0x1db   :  { %vm396_vm0 = vcmp.lt.s32.totalorder %v394_v21, %v395_v22 }
 0x1dc   :  { %v397_v24 = vsel %vm396_vm0, %v394_v21, %v395_v22 }
 0x1dd   :  { %v398_v25 = vrot.slane %v397_v24, 1 }
 0x1df   :  { %vm399_vm3 = vcmp.lt.s32.totalorder %v397_v24, %v398_v25 }
 0x1e0   :  { %v400_v27 = vsel %vm399_vm3, %v397_v24, %v398_v25 }
 0x1e1   :  { %vm402_vm4 = vcmp.eq.s32.totalorder %v776_v26, %v400_v27  ;;  %577 = vst.msk [vmem:[%s925_s5 + $0x1] sm:$0x1] %vm265_vm8, %v400_v27  ;;  %vm401_vm5 = vcmp.eq.s32.totalorder %v773_v23, %v400_v27 }
 0x1e2   :  { %634 = vmatprep.subr.msk.mxu0 %vm402_vm4, %v675_v39 }
 0x1e3   :  { %635 = vmatpush3.msk.msra.mxu0 %vm402_vm4, %v675_v39 }
 0x1e4   :  { %636 = vmatprep.subr.msk.mxu0 %vm401_vm5, %v675_v39 }
 0x1e5   :  { %637 = vmatpush3.msk.msra.mxu0 %vm401_vm5, %v675_v39 }
 0x1e6   :  { %639 = vmatmul.mubr.msk.f32.vlgmr.msra.gmra.mxu0 %vm163_vm1, %v793_v40 }
 0x1e7   :  { %641 = vmatprep.mubr.msk.f32.mxu0 %vm163_vm1, %v804_v42 }
 0x1ea   :  { %642 = vmatmul.mubr.msk.f32.gmra.mxu0 %vm163_vm1, %v821_v44  ;;  %vm525_vm1 = vcmask 0  }
 0x24d   :  { %v283_v26 = vpop.xlane.xlu1 %282 }
 0x24e   :  { %v284_v28 = vrot.slane %v283_v26, 4 }
 0x250   :  { %v285_v29 = vadd.f32 %v284_v28, %v283_v26 }
 0x252   :  { %v286_v30 = vrot.slane %v285_v29, 2 }
 0x254   :  { %v287_v31 = vadd.f32 %v286_v30, %v285_v29 }
 0x256   :  { %v288_v32 = vrot.slane %v287_v31, 1 }
 0x258   :  { %v289_v23 = vadd.f32 %v288_v32, %v287_v31 }
 0x25a   :  { %644 = vpush %v289_v23 }
 0x2a6   :  { %v640_v33 = vpop.f32.mrf.mxu0 }
 0x2a7   :  { %574 = vst.msk [vmem:[%s924_s4 + $0x28] sm:$0xff] %vm130_vm2, %v640_v33  ;;  %v500_v34 = vsub.f32 %v640_v33, %v826_v45 }
 0x2a8   :  { %v473_v35 = vpop.f32.mrf.mxu0 }
 0x2a9   :  { %573 = vst.msk [vmem:[%s924_s4 + $0x20] sm:$0xff] %vm130_vm2, %v473_v35  ;;  %v499_v36 = vsub.f32 %v473_v35, %v833_v46  ;;  %v504_v38 = vmul.f32 %v500_v34, %v500_v34 }
 0x2aa   :  { %v643_v37 = vpop.f32.mrf.mxu0 }
 0x2ab   :  { %v503_v39 = vmul.f32 %v499_v36, %v499_v36  ;;  %576 = vst.msk [vmem:[%s924_s4 + $0x38] sm:$0xff] %vm130_vm2, %v643_v37  ;;  %v502_v40 = vsub.f32 %v643_v37, %v798_v41  ;;  %v508_v46 = vsel %vm130_vm2, %v504_v38, 0.0 }
 0x2ac   :  { %v483_v42 = vpop.f32.mrf.mxu0 }
 0x2ad   :  { %v507_v44 = vsel %vm130_vm2, %v503_v39, 0.0  ;;  %575 = vst.msk [vmem:[%s924_s4 + $0x30] sm:$0xff] %vm130_vm2, %v483_v42  ;;  %v501_v45 = vsub.f32 %v483_v42, %v810_v43  ;;  %v506_v47 = vmul.f32 %v502_v40, %v502_v40  ;;  %s645_s4 = spop %644 }
 0x2ae   :  { %v509_v49 = vadd.f32 %v508_v46, %v507_v44  ;;  %v291_v43 = vstv %s645_s4 }
 0x2af   :  { %v505_v48 = vmul.f32 %v501_v45, %v501_v45  ;;  %v512_v41 = vsel %vm130_vm2, %v506_v47, 0.0 }
 0x2b1   :  { %v510_v50 = vsel %vm130_vm2, %v505_v48, 0.0 }
 0x2b2   :  { %v511_v51 = vadd.f32 %v510_v50, %v509_v49 }
 0x2b4   :  { %v513_v52 = vadd.f32 %v512_v41, %v511_v51 }
 0x2b6   :  { %514 = vadd.xlane.f32.xlu1 %v513_v52 }
 0x33f   :  { %v515_v53 = vpop.xlane.xlu1 %514 }
 0x340   :  { %v516_v54 = vrot.slane %v515_v53, 4 }
 0x342   :  { %v517_v55 = vadd.f32 %v516_v54, %v515_v53 }
 0x344   :  { %v518_v56 = vrot.slane %v517_v55, 2 }
 0x346   :  { %v519_v57 = vadd.f32 %v518_v56, %v517_v55 }
 0x348   :  { %v520_v58 = vrot.slane %v519_v57, 1 }
 0x34a   :  { %v521_v59 = vadd.f32 %v520_v58, %v519_v57 }
 0x34c   :  { %646 = vpush %v521_v59 }
 0x37d   :  { %s647_s20 = spop %646 }
 0x37e   :  { %v523_v60 = vstv %s647_s20 }
 0x37f   :  { %v524_v61 = vadd.f32 %v523_v60, %v291_v43 }
 0x381   :  { %526 = vst.msk [vmem:[#allocation2] sm:$0x1] %vm525_vm1, %v524_v61 }
 0x382   :  { %663 = shalt.err (!%p660_p4)
}
 0x383   :  { %540 = dma.vmem_to_hbm [thread:$0]  %s538_s19, 16, %s926_s6, [#allocation3]  }
 0x384   :  { %672 = dma.done.wait [#allocation3], 16  }
 0x385   :  { %673 = vsyncadd [#allocation3], 4294967280 }
 0x386   :  { %548 = vsyncpa [#allocation3], 1 }

</bundles_post_ra>
